<compile_context>
chip_gen: v7x
topology: tpu7x:2x2x1
jax: 0.10.0
libtpu: 0.0.40
codegen_flags: <defaults>
</compile_context>

<pallas_src>
import functools

import jax
import jax.numpy as jnp
from jax.experimental import pallas as pl
from jax.experimental.pallas import tpu as pltpu

_LANES = 128
_SUBLANES = 8


def _round_up(x: int, m: int) -> int:
    return ((x + m - 1) // m) * m


def _mlp_kernel(x_ref, w1_ref, b1_ref, w2_ref, b2_ref, o_ref):
    # hidden = relu(x @ W1 + b1): bf16 MXU matmul, f32 accumulate/elementwise.
    h = jnp.dot(x_ref[...], w1_ref[...], preferred_element_type=jnp.float32)
    h = jnp.maximum(h + b1_ref[...], 0.0)          # b1 is (1, H) -> broadcasts
    # out = hidden @ W2 + b2: cast h back to bf16 for the MXU, accumulate f32.
    o = jnp.dot(h.astype(w2_ref.dtype), w2_ref[...],
                preferred_element_type=jnp.float32)
    o_ref[...] = (o + b2_ref[...]).astype(o_ref.dtype)   # b2 is (1, O_pad)


@functools.partial(jax.jit, static_argnames=("tile_b",))
def net_forward(x, w1, b1, w2, b2, *, tile_b: int = 512):
    """x: [B, F]; w1: [F, H]; b1: [H]; w2: [H, O]; b2: [O]  ->  [B, O] (f32)."""
    B, F = x.shape
    H = w1.shape[1]
    O = w2.shape[1]

    # Lane-dense logits: pad output feature dim to a multiple of 128.
    O_pad = _round_up(O, _LANES)

    # Batch tile: largest requested tile, rounded to sublane multiple, and the
    # batch padded up to a whole number of tiles.
    tb = _round_up(min(tile_b, _round_up(B, _SUBLANES)), _SUBLANES)
    B_pad = _round_up(B, tb)
    grid = (B_pad // tb,)

    # Cast activations/weights to bf16 (halves DMA bytes); biases stay f32.
    x_p = jnp.zeros((B_pad, F), jnp.bfloat16).at[:B].set(x.astype(jnp.bfloat16))
    w1_b = w1.astype(jnp.bfloat16)
    b1_2d = b1.reshape(1, H).astype(jnp.float32)
    w2_p = jnp.zeros((H, O_pad), jnp.bfloat16).at[:, :O].set(
        w2.astype(jnp.bfloat16))
    b2_2d = jnp.zeros((1, O_pad), jnp.float32).at[:, :O].set(
        b2.astype(jnp.float32))

    # VMEM budget: double-buffered x/out tiles + resident weights, with
    # headroom; clamped under the v7x scoped default (32 MiB).
    vmem_bytes = (
        2 * tb * F * 2            # x tiles   (bf16, double-buffered)
        + 2 * tb * O_pad * 4      # out tiles (f32,  double-buffered)
        + F * H * 2 + H * 4       # w1 (bf16) + b1 (f32)
        + H * O_pad * 2 + O_pad * 4  # w2 (bf16) + b2 (f32)
    )
    vmem_limit = min(2 * vmem_bytes + (1 << 20), 32 * 1024 * 1024)

    cost = pl.CostEstimate(
        flops=2 * B_pad * F * H + 2 * B_pad * H * O_pad,
        transcendentals=0,
        bytes_accessed=(B_pad * F * 2 + F * H * 2 + H * 4
                        + H * O_pad * 2 + O_pad * 4 + B_pad * O_pad * 4),
    )

    out = pl.pallas_call(
        _mlp_kernel,
        out_shape=jax.ShapeDtypeStruct((B_pad, O_pad), jnp.float32),
        grid=grid,
        in_specs=[
            pl.BlockSpec((tb, F), lambda i: (i, 0)),      # x tile (pipelined)
            pl.BlockSpec((F, H), lambda i: (0, 0)),       # w1 (resident)
            pl.BlockSpec((1, H), lambda i: (0, 0)),       # b1 (resident)
            pl.BlockSpec((H, O_pad), lambda i: (0, 0)),   # w2 (resident)
            pl.BlockSpec((1, O_pad), lambda i: (0, 0)),   # b2 (resident)
        ],
        out_specs=pl.BlockSpec((tb, O_pad), lambda i: (i, 0)),
        compiler_params=pltpu.CompilerParams(
            dimension_semantics=("parallel",),
            vmem_limit_bytes=int(vmem_limit),
        ),
        cost_estimate=cost,
    )(x_p, w1_b, b1_2d, w2_p, b2_2d)

    return out[:B, :O]


def init_params(key, n_feature, n_hidden, n_output, dtype=jnp.float32):
    """Deterministic init mimicking torch.nn.Linear (uniform +-1/sqrt(fan_in)).
    Weights are returned already transposed to [in, out] for the kernel."""
    k1, k2, k3, k4 = jax.random.split(key, 4)
    bound1 = 1.0 / jnp.sqrt(jnp.asarray(n_feature, dtype))
    bound2 = 1.0 / jnp.sqrt(jnp.asarray(n_hidden, dtype))
    w1 = jax.random.uniform(k1, (n_feature, n_hidden), dtype, -bound1, bound1)
    b1 = jax.random.uniform(k2, (n_hidden,), dtype, -bound1, bound1)
    w2 = jax.random.uniform(k3, (n_hidden, n_output), dtype, -bound2, bound2)
    b2 = jax.random.uniform(k4, (n_output,), dtype, -bound2, bound2)
    return w1, b1, w2, b2


if __name__ == "__main__":
    # Iris-style sizes: 4 input features, small hidden layer, 3 classes.
    # NOTE: at this tiny scale plain XLA beats any Pallas kernel; the tiled /
    # pipelined structure here pays off once B grows large.
    batch, n_feature, n_hidden, n_output = 8, 4, 32, 3

    key = jax.random.PRNGKey(0)
    kx, kp = jax.random.split(key)
    x = jax.random.normal(kx, (batch, n_feature), dtype=jnp.float32)
    w1, b1, w2, b2 = init_params(kp, n_feature, n_hidden, n_output)

    out = net_forward(x, w1, b1, w2, b2)
    out = jax.block_until_ready(out)

    # Reference emulating the same bf16 rounding (f32 accumulation), so the
    # comparison isolates kernel correctness from the dtype choice.
    xb = x.astype(jnp.bfloat16).astype(jnp.float32)
    w1b = w1.astype(jnp.bfloat16).astype(jnp.float32)
    w2b = w2.astype(jnp.bfloat16).astype(jnp.float32)
    h_ref = jnp.maximum(xb @ w1b + b1, 0.0)
    ref = h_ref.astype(jnp.bfloat16).astype(jnp.float32) @ w2b + b2

    assert out.shape == (batch, n_output)
    assert jnp.allclose(out, ref, atol=1e-3, rtol=1e-3), (out, ref)

    print("KERNEL_OK")
</pallas_src>

<mosaic_0001>
module attributes {stable_mosaic.version = 11 : i64} {
  func.func @_mlp_kernel(%arg0: i32, %arg1: memref<8x4xbf16, #tpu.memory_space<vmem>>, %arg2: memref<4x32xbf16, #tpu.memory_space<vmem>>, %arg3: memref<1x32xf32, #tpu.memory_space<vmem>>, %arg4: memref<32x128xbf16, #tpu.memory_space<vmem>>, %arg5: memref<1x128xf32, #tpu.memory_space<vmem>>, %arg6: memref<8x128xf32, #tpu.memory_space<vmem>>) attributes {dimension_semantics = [#tpu.dimension_semantics<parallel>], iteration_bounds = array<i64: 1>, scalar_prefetch = 0 : i64, scratch_operands = 0 : i64, tpu.core_type = #tpu.core_type<tc>, window_params = [{transform_indices = @transform_0, window_bounds = array<i64: 8, 4>}, {pipeline_mode = #tpu.pipeline_mode<synchronous>, transform_indices = @transform_1, window_bounds = array<i64: 4, 32>}, {pipeline_mode = #tpu.pipeline_mode<synchronous>, transform_indices = @transform_2, window_bounds = array<i64: 1, 32>}, {pipeline_mode = #tpu.pipeline_mode<synchronous>, transform_indices = @transform_3, window_bounds = array<i64: 32, 128>}, {pipeline_mode = #tpu.pipeline_mode<synchronous>, transform_indices = @transform_4, window_bounds = array<i64: 1, 128>}, {transform_indices = @transform_5, window_bounds = array<i64: 8, 128>}]} {
    %c0 = arith.constant 0 : index
    %c0_0 = arith.constant 0 : index
    %0 = vector.load %arg1[%c0, %c0_0] : memref<8x4xbf16, #tpu.memory_space<vmem>>, vector<8x4xbf16>
    %c0_1 = arith.constant 0 : index
    %c0_2 = arith.constant 0 : index
    %1 = vector.load %arg2[%c0_1, %c0_2] : memref<4x32xbf16, #tpu.memory_space<vmem>>, vector<4x32xbf16>
    %cst = arith.constant dense<0.000000e+00> : vector<8x32xf32>
    %2 = tpu.matmul %0, %1, %cst {dimension_numbers = #tpu.dot_dimension_numbers<[1], [0], [0], [1], [0, 0, 1, 1], [], []>} : vector<8x4xbf16>, vector<4x32xbf16>, vector<8x32xf32> -> vector<8x32xf32>
    %c0_3 = arith.constant 0 : index
    %c0_4 = arith.constant 0 : index
    %3 = vector.load %arg3[%c0_3, %c0_4] : memref<1x32xf32, #tpu.memory_space<vmem>>, vector<1x32xf32>
    %4 = vector.broadcast %3 : vector<1x32xf32> to vector<8x32xf32>
    %5 = arith.addf %2, %4 : vector<8x32xf32>
    %cst_5 = arith.constant 0.000000e+00 : f32
    %6 = vector.broadcast %cst_5 : f32 to vector<8x32xf32>
    %7 = arith.maximumf %5, %6 : vector<8x32xf32>
    %8 = arith.truncf %7 : vector<8x32xf32> to vector<8x32xbf16>
    %c0_6 = arith.constant 0 : index
    %c0_7 = arith.constant 0 : index
    %9 = vector.load %arg4[%c0_6, %c0_7] : memref<32x128xbf16, #tpu.memory_space<vmem>>, vector<32x128xbf16>
    %cst_8 = arith.constant dense<0.000000e+00> : vector<8x128xf32>
    %10 = tpu.matmul %8, %9, %cst_8 {dimension_numbers = #tpu.dot_dimension_numbers<[1], [0], [0], [1], [0, 0, 1, 1], [], []>} : vector<8x32xbf16>, vector<32x128xbf16>, vector<8x128xf32> -> vector<8x128xf32>
    %c0_9 = arith.constant 0 : index
    %c0_10 = arith.constant 0 : index
    %11 = vector.load %arg5[%c0_9, %c0_10] : memref<1x128xf32, #tpu.memory_space<vmem>>, vector<1x128xf32>
    %12 = vector.broadcast %11 : vector<1x128xf32> to vector<8x128xf32>
    %13 = arith.addf %10, %12 : vector<8x128xf32>
    %c0_11 = arith.constant 0 : index
    %c0_12 = arith.constant 0 : index
    %14 = vector.load %arg6[%c0_11, %c0_12] : memref<8x128xf32, #tpu.memory_space<vmem>>, vector<8x128xf32>
    tpu.vector_store %arg6[%c0_11, %c0_12], %13 {strides = array<i32>} : memref<8x128xf32, #tpu.memory_space<vmem>>, vector<8x128xf32>,
    return
  }
  func.func @transform_0(%arg0: i32) -> (i32, i32) {
    %c0_i32 = arith.constant 0 : i32
    %c0_i32_0 = arith.constant 0 : i32
    return %arg0, %c0_i32 : i32, i32
  }
  func.func @transform_1(%arg0: i32) -> (i32, i32) {
    %c0_i32 = arith.constant 0 : i32
    %c0_i32_0 = arith.constant 0 : i32
    %c0_i32_1 = arith.constant 0 : i32
    return %c0_i32, %c0_i32_0 : i32, i32
  }
  func.func @transform_2(%arg0: i32) -> (i32, i32) {
    %c0_i32 = arith.constant 0 : i32
    %c0_i32_0 = arith.constant 0 : i32
    %c0_i32_1 = arith.constant 0 : i32
    return %c0_i32, %c0_i32_0 : i32, i32
  }
  func.func @transform_3(%arg0: i32) -> (i32, i32) {
    %c0_i32 = arith.constant 0 : i32
    %c0_i32_0 = arith.constant 0 : i32
    %c0_i32_1 = arith.constant 0 : i32
    return %c0_i32, %c0_i32_0 : i32, i32
  }
  func.func @transform_4(%arg0: i32) -> (i32, i32) {
    %c0_i32 = arith.constant 0 : i32
    %c0_i32_0 = arith.constant 0 : i32
    %c0_i32_1 = arith.constant 0 : i32
    return %c0_i32, %c0_i32_0 : i32, i32
  }
  func.func @transform_5(%arg0: i32) -> (i32, i32) {
    %c0_i32 = arith.constant 0 : i32
    %c0_i32_0 = arith.constant 0 : i32
    return %arg0, %c0_i32 : i32, i32
  }
}

</mosaic_0001>

<bundles_post_ra>
// kernel: net_forward.1
= control target key start
LH: loop header
LB: loop body
LE: loop exit
PB: predicated region body
PF: predicated region fallthrough
CT: control target
= control target key end

     0   :  { %vm34_vm0 = vcmask 1041408   ;;  %v181_v0 = vmov 0.0   ;;  %vm182_vm1 = vmmov 0   ;;  %vm30_vm2 = vcmask 31744   ;;  %s234_s1 = inlined_call_operand.vmem [shape: bf16[4,32], index: 1, kind: input, shape index: {}]   ;;  %s235_s0 = inlined_call_operand.vmem [shape: bf16[8,4], index: 0, kind: input, shape index: {}]   ;;  %s236_s3 = inlined_call_operand.vmem [shape: bf16[32,128], index: 3, kind: input, shape index: {}]   ;;  %s237_s2 = inlined_call_operand.vmem [shape: f32[1,32], index: 2, kind: input, shape index: {}]   ;;  %s238_s4 = inlined_call_operand.vmem [shape: f32[1,128], index: 4, kind: input, shape index: {}]   ;;  %s239_s5 = inlined_call_operand.vmem [shape: f32[8,128], index: 5, kind: output, shape index: {}]  }
   0x1   :  { %163 = vmatprep.subr.bf16.mxu0 %v181_v0  ;;  %v22_v1 = vld [vmem:[%s234_s1] sm:$0x3]  ;;  %165 = vmatprep.mubr.msk.bf16.mxu0 %vm182_vm1, %v181_v0  ;;  %v180_v5 = vld [vmem:[%s236_s3 + $0x8] sm:$0xff]   ;;  %vm103_vm3 = vcmask 261120  }
   0x2   :  { %v36_v2 = vsel %vm34_vm0, %v22_v1, 0  ;;  %169 = vmatprep.subr.bf16.mxu1 %v181_v0  ;;  %173 = vmatprep.mubr.msk.bf16.mxu1 %vm182_vm1, %v181_v0  ;;  %v21_v3 = vld [vmem:[%s235_s0] sm:$0xf] }
   0x3   :  { %164 = vmatpush3.bf16.msra.mxu0 %v36_v2  ;;  %v179_v4 = vld [vmem:[%s236_s3] sm:$0xff]  }
   0x4   :  { %170 = vmatpush3.bf16.msra.mxu1 %v179_v4  ;;  %v152_v6 = vld [vmem:[%s237_s2] ss:$0 sm:$0xff] }
   0x5   :  { %171 = vmatprep.subr.bf16.mxu1 %v181_v0  ;;  %v154_v14 = vld [vmem:[%s238_s4] ss:$0 sm:$0xff] }
   0x6   :  { %166 = vmatmul.mubr.msk.bf16.vlgmr.msra.gmra.mrb[0].mxu0 %vm30_vm2, %v21_v3 }
   0x8   :  { %172 = vmatpush3.bf16.msra.mxu1 %v180_v5 }
  0xd9   :  { %v72_v7 = vpop.f32.mrb[0].mxu0 }
  0xda   :  { %v73_v8 = vadd.f32 %v152_v6, %v72_v7  ;;  %v167_v9 = vpop.f32.mrb[1].mxu0 }
  0xdb   :  { %v75_v10 = vpop.f32.mrb[2].mxu0 }
  0xdc   :  { %v78_v11 = vmax.f32 %v73_v8, 0.0  ;;  %v168_v12 = vpop.f32.mrb[3].mxu0 }
  0xde   :  { %v79_v13 = vpack.c.bf16 %v78_v11, %v78_v11 }
  0xe0   :  { %174 = vmatmul.mubr.msk.bf16.vlgmr.msra.gmra.mrb[0].mxu1 %vm103_vm3, %v79_v13 }
 0x1b3   :  { %v141_v15 = vpop.f32.mrb[0].mxu1 }
 0x1b4   :  { %v142_v16 = vadd.f32 %v154_v14, %v141_v15  ;;  %v175_v17 = vpop.f32.mrb[1].mxu1 }
 0x1b5   :  { %v144_v18 = vpop.f32.mrb[2].mxu1 }
 0x1b6   :  { %147 = vst [vmem:[%s239_s5] sm:$0xff] %v142_v16  ;;  %v176_v19 = vpop.f32.mrb[3].mxu1 }

</bundles_post_ra>
